<compile_context>
chip_gen: v7x
topology: tpu7x:2x2x1
jax: 0.10.0
libtpu: 0.0.40
codegen_flags: <defaults>
</compile_context>

<pallas_src>
import jax
import jax.numpy as jnp
from jax.experimental import pallas as pl
from jax.experimental.pallas import tpu as pltpu


# ---------------------------------------------------------------------------
# Pallas kernel: fused MLP forward (weights already divided by sigma)
#   h1 = leaky_relu(x @ W1a + g @ W1b + b1)
#   h2 = leaky_relu(h1 @ W2 + b2)
#   z  = W3row . h2^T + b3          (lane-dense (1, tb) result)
#   out = sigmoid(z) = 0.5 * (tanh(z/2) + 1)
# ---------------------------------------------------------------------------
def _critic_kernel(b3_ref,                       # SMEM [1] f32: layer-3 bias
                   x_ref, g_ref,                 # VMEM [tb, L]   bf16
                   w1a_ref, w1b_ref, b1_ref,     # VMEM [L, L] bf16, [L, L] bf16, [1, L] f32
                   w2_ref, b2_ref,               # VMEM [L, Lh] bf16, [1, Lh] f32
                   w3_ref,                       # VMEM [1, Lh] bf16
                   out_ref):                     # VMEM [1, tb]  f32 (lane-dense)
    slope = jnp.float32(0.01)                    # nn.LeakyReLU() default

    # layer 1 (concat fused: two half-matmuls, bf16 operands, f32 accumulate)
    h = (jnp.dot(x_ref[...], w1a_ref[...], preferred_element_type=jnp.float32)
         + jnp.dot(g_ref[...], w1b_ref[...], preferred_element_type=jnp.float32))
    h = h + b1_ref[...]
    h = jnp.maximum(h, slope * h)                # LeakyReLU

    # layer 2
    h = jnp.dot(h.astype(jnp.bfloat16), w2_ref[...],
                preferred_element_type=jnp.float32)
    h = h + b2_ref[...]
    h = jnp.maximum(h, slope * h)                # LeakyReLU

    # layer 3: contract the Lh axis of both operands -> (1, tb) lane-dense
    z = jax.lax.dot_general(
        w3_ref[...], h.astype(jnp.bfloat16),
        dimension_numbers=(((1,), (1,)), ((), ())),
        preferred_element_type=jnp.float32)
    z = z + b3_ref[0]

    # numerically-stable sigmoid: 0.5 * (tanh(z/2) + 1)  (single EUP op)
    out_ref[...] = 0.5 * (jnp.tanh(0.5 * z) + 1.0)


def _choose_tile_b(B):
    """Batch tile: whole batch if it fits one big tile; otherwise 1024-row
    tiles, with a split tile for 1024 < B <= 2048 so the grid has >= 2 steps
    (engages both v7x TensorCores).  Always a multiple of 128 when tiled so
    the lane-dense output block stays legal."""
    if B <= 1024:
        return B
    half = ((((B + 1) // 2) + 127) // 128) * 128   # round_up(cdiv(B,2), 128)
    return min(1024, half)


def critic_forward_pallas(b3, x, g, w1a, w1b, b1, w2, b2, w3row):
    """b3: [1] f32 (SMEM). x, g: [B, L] bf16. Weights pre-transposed [in, out],
    pre-divided by sigma, bf16. Biases f32. Returns sigmoid output [B, 1] f32."""
    B, L = x.shape
    Lh = w2.shape[1]

    tile_b = _choose_tile_b(B)
    grid = (pl.cdiv(B, tile_b),)

    const = lambda shape: pl.BlockSpec(shape, lambda i: (0, 0))   # grid-invariant

    out = pl.pallas_call(
        _critic_kernel,
        out_shape=jax.ShapeDtypeStruct((1, B), jnp.float32),
        grid=grid,
        in_specs=[
            pl.BlockSpec(memory_space=pltpu.MemorySpace.SMEM),    # b3
            pl.BlockSpec((tile_b, L), lambda i: (i, 0)),          # x
            pl.BlockSpec((tile_b, L), lambda i: (i, 0)),          # g
            const((L, L)),                                        # w1a
            const((L, L)),                                        # w1b
            const((1, L)),                                        # b1
            const((L, Lh)),                                       # w2
            const((1, Lh)),                                       # b2
            const((1, Lh)),                                       # w3 row
        ],
        out_specs=pl.BlockSpec((1, tile_b), lambda i: (0, i)),    # lane-dense
        compiler_params=pltpu.CompilerParams(
            dimension_semantics=("parallel",)),
    )(b3, x, g, w1a, w1b, b1, w2, b2, w3row)

    return out.reshape(B, 1)


# ---------------------------------------------------------------------------
# Spectral norm sigma (glue, tiny mat-vec ops) — matches SpectralNorm._update_u_v
# ---------------------------------------------------------------------------
def _l2normalize(v, eps=1e-12):
    return v / (jnp.linalg.norm(v) + eps)


def spectral_sigma(w, u, v, power_iterations=1):
    # w: [out, in] (PyTorch Linear convention), u: [out], v: [in]
    for _ in range(power_iterations):
        v = _l2normalize(w.T @ u)
        u = _l2normalize(w @ v)
    return jnp.dot(u, w @ v)
    # TODO(synk): persist the updated u/v buffers across calls to fully match
    # PyTorch SpectralNorm's in-place training-time behavior.


# ---------------------------------------------------------------------------
# Parameter init (mirrors nn.Linear default init + SpectralNorm u/v init)
# ---------------------------------------------------------------------------
def init_critic_params(key, latent_dim=64):
    L = latent_dim
    dims = [(2 * L, L), (L, L // 2), (L // 2, 1)]   # (in, out) per layer
    params = []
    for (fan_in, fan_out) in dims:
        key, kw, kb, ku, kv = jax.random.split(key, 5)
        bound = 1.0 / jnp.sqrt(fan_in)
        w = jax.random.uniform(kw, (fan_out, fan_in), jnp.float32,
                               -bound, bound)        # [out, in]
        b = jax.random.uniform(kb, (fan_out,), jnp.float32, -bound, bound)
        u = _l2normalize(jax.random.normal(ku, (fan_out,), jnp.float32))
        v = _l2normalize(jax.random.normal(kv, (fan_in,), jnp.float32))
        params.append({"w_bar": w, "b": b, "u": u, "v": v})
    return params


# ---------------------------------------------------------------------------
# Whole forward, jitted: sigma + weight prep (transpose, 1/sigma fold, bf16
# cast) all fuse under jit; no normalized-weight HBM round trip.
# ---------------------------------------------------------------------------
@jax.jit
def critic_forward(params, x, g):
    L = x.shape[1]

    sig = [spectral_sigma(p["w_bar"], p["u"], p["v"], power_iterations=1)
           for p in params]

    # Pre-transpose to [in, out], fold 1/sigma into the weights, cast to bf16.
    w1t = (params[0]["w_bar"] / sig[0]).T                      # [2L, L]
    w1a = w1t[:L].astype(jnp.bfloat16)                         # [L, L]
    w1b = w1t[L:].astype(jnp.bfloat16)                         # [L, L]
    w2t = (params[1]["w_bar"] / sig[1]).T.astype(jnp.bfloat16) # [L, L//2]
    w3row = (params[2]["w_bar"] / sig[2]).astype(jnp.bfloat16) # [1, L//2]

    b1 = params[0]["b"].reshape(1, -1).astype(jnp.float32)
    b2 = params[1]["b"].reshape(1, -1).astype(jnp.float32)
    b3 = params[2]["b"].astype(jnp.float32)                    # [1]

    return critic_forward_pallas(b3,
                                 x.astype(jnp.bfloat16),
                                 g.astype(jnp.bfloat16),
                                 w1a, w1b, b1, w2t, b2, w3row)


# ---------------------------------------------------------------------------
# Pure-JAX f32 reference (for correctness check only)
# ---------------------------------------------------------------------------
def critic_forward_ref(params, x, g):
    inp = jnp.concatenate([x, g], axis=1).astype(jnp.float32)
    h = inp
    for i, p in enumerate(params):
        sigma = spectral_sigma(p["w_bar"], p["u"], p["v"], power_iterations=1)
        w = p["w_bar"] / sigma
        h = h @ w.T + p["b"]
        if i < 2:
            h = jnp.where(h >= 0, h, 0.01 * h)
    return jax.nn.sigmoid(h)


def _check(params, batch, latent_dim, seed):
    kx, kg = jax.random.split(jax.random.PRNGKey(seed))
    x = jax.random.normal(kx, (batch, latent_dim), jnp.float32)
    g = jax.random.normal(kg, (batch, latent_dim), jnp.float32)

    out = jax.block_until_ready(critic_forward(params, x, g))
    assert out.shape == (batch, 1), out.shape
    assert bool(jnp.all(jnp.isfinite(out)))
    assert bool(jnp.all((out >= 0.0) & (out <= 1.0)))

    ref = critic_forward_ref(params, x, g)
    # bf16 input/weight streaming -> relaxed tolerance vs the f32 reference.
    assert bool(jnp.allclose(out, ref, atol=2e-2, rtol=2e-2)), (
        float(jnp.max(jnp.abs(out - ref))))


if __name__ == "__main__":
    latent_dim = 64
    key = jax.random.PRNGKey(0)
    params = init_critic_params(key, latent_dim=latent_dim)

    # Small demo batch (single grid step) ...
    _check(params, batch=8, latent_dim=latent_dim, seed=1)
    # ... and a tiled batch exercising the >=2-step parallel grid + partial tile.
    _check(params, batch=1337, latent_dim=latent_dim, seed=2)

    print("KERNEL_OK")
</pallas_src>

<mosaic_0001>
module attributes {stable_mosaic.version = 11 : i64} {
  func.func @_critic_kernel(%arg0: i32, %arg1: memref<1xf32, #tpu.memory_space<smem>>, %arg2: memref<8x64xbf16, #tpu.memory_space<vmem>>, %arg3: memref<8x64xbf16, #tpu.memory_space<vmem>>, %arg4: memref<64x64xbf16, #tpu.memory_space<vmem>>, %arg5: memref<64x64xbf16, #tpu.memory_space<vmem>>, %arg6: memref<1x64xf32, #tpu.memory_space<vmem>>, %arg7: memref<64x32xbf16, #tpu.memory_space<vmem>>, %arg8: memref<1x32xf32, #tpu.memory_space<vmem>>, %arg9: memref<1x32xbf16, #tpu.memory_space<vmem>>, %arg10: memref<1x8xf32, #tpu.memory_space<vmem>>) attributes {dimension_semantics = [#tpu.dimension_semantics<parallel>], iteration_bounds = array<i64: 1>, scalar_prefetch = 0 : i64, scratch_operands = 0 : i64, tpu.core_type = #tpu.core_type<tc>, window_params = [{transform_indices = @transform_0, window_bounds = array<i64: 1>}, {transform_indices = @transform_1, window_bounds = array<i64: 8, 64>}, {transform_indices = @transform_2, window_bounds = array<i64: 8, 64>}, {pipeline_mode = #tpu.pipeline_mode<synchronous>, transform_indices = @transform_3, window_bounds = array<i64: 64, 64>}, {pipeline_mode = #tpu.pipeline_mode<synchronous>, transform_indices = @transform_4, window_bounds = array<i64: 64, 64>}, {pipeline_mode = #tpu.pipeline_mode<synchronous>, transform_indices = @transform_5, window_bounds = array<i64: 1, 64>}, {pipeline_mode = #tpu.pipeline_mode<synchronous>, transform_indices = @transform_6, window_bounds = array<i64: 64, 32>}, {pipeline_mode = #tpu.pipeline_mode<synchronous>, transform_indices = @transform_7, window_bounds = array<i64: 1, 32>}, {pipeline_mode = #tpu.pipeline_mode<synchronous>, transform_indices = @transform_8, window_bounds = array<i64: 1, 32>}, {transform_indices = @transform_9, window_bounds = array<i64: 1, 8>}]} {
    %c0 = arith.constant 0 : index
    %c0_0 = arith.constant 0 : index
    %0 = vector.load %arg2[%c0, %c0_0] : memref<8x64xbf16, #tpu.memory_space<vmem>>, vector<8x64xbf16>
    %c0_1 = arith.constant 0 : index
    %c0_2 = arith.constant 0 : index
    %1 = vector.load %arg4[%c0_1, %c0_2] : memref<64x64xbf16, #tpu.memory_space<vmem>>, vector<64x64xbf16>
    %cst = arith.constant dense<0.000000e+00> : vector<8x64xf32>
    %2 = tpu.matmul %0, %1, %cst {dimension_numbers = #tpu.dot_dimension_numbers<[1], [0], [0], [1], [0, 0, 1, 1], [], []>} : vector<8x64xbf16>, vector<64x64xbf16>, vector<8x64xf32> -> vector<8x64xf32>
    %c0_3 = arith.constant 0 : index
    %c0_4 = arith.constant 0 : index
    %3 = vector.load %arg3[%c0_3, %c0_4] : memref<8x64xbf16, #tpu.memory_space<vmem>>, vector<8x64xbf16>
    %c0_5 = arith.constant 0 : index
    %c0_6 = arith.constant 0 : index
    %4 = vector.load %arg5[%c0_5, %c0_6] : memref<64x64xbf16, #tpu.memory_space<vmem>>, vector<64x64xbf16>
    %cst_7 = arith.constant dense<0.000000e+00> : vector<8x64xf32>
    %5 = tpu.matmul %3, %4, %cst_7 {dimension_numbers = #tpu.dot_dimension_numbers<[1], [0], [0], [1], [0, 0, 1, 1], [], []>} : vector<8x64xbf16>, vector<64x64xbf16>, vector<8x64xf32> -> vector<8x64xf32>
    %6 = arith.addf %2, %5 : vector<8x64xf32>
    %c0_8 = arith.constant 0 : index
    %c0_9 = arith.constant 0 : index
    %7 = vector.load %arg6[%c0_8, %c0_9] : memref<1x64xf32, #tpu.memory_space<vmem>>, vector<1x64xf32>
    %8 = vector.broadcast %7 : vector<1x64xf32> to vector<8x64xf32>
    %9 = arith.addf %6, %8 : vector<8x64xf32>
    %cst_10 = arith.constant 0.00999999977 : f32
    %10 = vector.broadcast %cst_10 : f32 to vector<8x64xf32>
    %11 = arith.mulf %10, %9 : vector<8x64xf32>
    %12 = arith.maximumf %9, %11 : vector<8x64xf32>
    %13 = arith.truncf %12 : vector<8x64xf32> to vector<8x64xbf16>
    %c0_11 = arith.constant 0 : index
    %c0_12 = arith.constant 0 : index
    %14 = vector.load %arg7[%c0_11, %c0_12] : memref<64x32xbf16, #tpu.memory_space<vmem>>, vector<64x32xbf16>
    %cst_13 = arith.constant dense<0.000000e+00> : vector<8x32xf32>
    %15 = tpu.matmul %13, %14, %cst_13 {dimension_numbers = #tpu.dot_dimension_numbers<[1], [0], [0], [1], [0, 0, 1, 1], [], []>} : vector<8x64xbf16>, vector<64x32xbf16>, vector<8x32xf32> -> vector<8x32xf32>
    %c0_14 = arith.constant 0 : index
    %c0_15 = arith.constant 0 : index
    %16 = vector.load %arg8[%c0_14, %c0_15] : memref<1x32xf32, #tpu.memory_space<vmem>>, vector<1x32xf32>
    %17 = vector.broadcast %16 : vector<1x32xf32> to vector<8x32xf32>
    %18 = arith.addf %15, %17 : vector<8x32xf32>
    %cst_16 = arith.constant 0.00999999977 : f32
    %19 = vector.broadcast %cst_16 : f32 to vector<8x32xf32>
    %20 = arith.mulf %19, %18 : vector<8x32xf32>
    %21 = arith.maximumf %18, %20 : vector<8x32xf32>
    %c0_17 = arith.constant 0 : index
    %c0_18 = arith.constant 0 : index
    %22 = vector.load %arg9[%c0_17, %c0_18] : memref<1x32xbf16, #tpu.memory_space<vmem>>, vector<1x32xbf16>
    %23 = arith.truncf %21 : vector<8x32xf32> to vector<8x32xbf16>
    %cst_19 = arith.constant dense<0.000000e+00> : vector<1x8xf32>
    %24 = tpu.matmul %22, %23, %cst_19 {dimension_numbers = #tpu.dot_dimension_numbers<[1], [1], [0], [0], [0, 0, 1, 0], [], []>} : vector<1x32xbf16>, vector<8x32xbf16>, vector<1x8xf32> -> vector<1x8xf32>
    %c0_20 = arith.constant 0 : index
    %25 = memref.load %arg1[%c0_20] : memref<1xf32, #tpu.memory_space<smem>>
    %26 = vector.broadcast %25 : f32 to vector<1x8xf32>
    %27 = arith.addf %24, %26 : vector<1x8xf32>
    %cst_21 = arith.constant 5.000000e-01 : f32
    %28 = vector.broadcast %cst_21 : f32 to vector<1x8xf32>
    %29 = arith.mulf %28, %27 : vector<1x8xf32>
    %30 = math.tanh %29 : vector<1x8xf32>
    %cst_22 = arith.constant 1.000000e+00 : f32
    %31 = vector.broadcast %cst_22 : f32 to vector<1x8xf32>
    %32 = arith.addf %30, %31 : vector<1x8xf32>
    %cst_23 = arith.constant 5.000000e-01 : f32
    %33 = vector.broadcast %cst_23 : f32 to vector<1x8xf32>
    %34 = arith.mulf %33, %32 : vector<1x8xf32>
    %c0_24 = arith.constant 0 : index
    %c0_25 = arith.constant 0 : index
    %35 = vector.load %arg10[%c0_24, %c0_25] : memref<1x8xf32, #tpu.memory_space<vmem>>, vector<1x8xf32>
    tpu.vector_store %arg10[%c0_24, %c0_25], %34 {strides = array<i32>} : memref<1x8xf32, #tpu.memory_space<vmem>>, vector<1x8xf32>,
    return
  }
  func.func @transform_0(%arg0: i32) -> i32 {
    %c0_i32 = arith.constant 0 : i32
    %c0_i32_0 = arith.constant 0 : i32
    return %c0_i32 : i32
  }
  func.func @transform_1(%arg0: i32) -> (i32, i32) {
    %c0_i32 = arith.constant 0 : i32
    %c0_i32_0 = arith.constant 0 : i32
    return %arg0, %c0_i32 : i32, i32
  }
  func.func @transform_2(%arg0: i32) -> (i32, i32) {
    %c0_i32 = arith.constant 0 : i32
    %c0_i32_0 = arith.constant 0 : i32
    return %arg0, %c0_i32 : i32, i32
  }
  func.func @transform_3(%arg0: i32) -> (i32, i32) {
    %c0_i32 = arith.constant 0 : i32
    %c0_i32_0 = arith.constant 0 : i32
    %c0_i32_1 = arith.constant 0 : i32
    return %c0_i32, %c0_i32_0 : i32, i32
  }
  func.func @transform_4(%arg0: i32) -> (i32, i32) {
    %c0_i32 = arith.constant 0 : i32
    %c0_i32_0 = arith.constant 0 : i32
    %c0_i32_1 = arith.constant 0 : i32
    return %c0_i32, %c0_i32_0 : i32, i32
  }
  func.func @transform_5(%arg0: i32) -> (i32, i32) {
    %c0_i32 = arith.constant 0 : i32
    %c0_i32_0 = arith.constant 0 : i32
    %c0_i32_1 = arith.constant 0 : i32
    return %c0_i32, %c0_i32_0 : i32, i32
  }
  func.func @transform_6(%arg0: i32) -> (i32, i32) {
    %c0_i32 = arith.constant 0 : i32
    %c0_i32_0 = arith.constant 0 : i32
    %c0_i32_1 = arith.constant 0 : i32
    return %c0_i32, %c0_i32_0 : i32, i32
  }
  func.func @transform_7(%arg0: i32) -> (i32, i32) {
    %c0_i32 = arith.constant 0 : i32
    %c0_i32_0 = arith.constant 0 : i32
    %c0_i32_1 = arith.constant 0 : i32
    return %c0_i32, %c0_i32_0 : i32, i32
  }
  func.func @transform_8(%arg0: i32) -> (i32, i32) {
    %c0_i32 = arith.constant 0 : i32
    %c0_i32_0 = arith.constant 0 : i32
    %c0_i32_1 = arith.constant 0 : i32
    return %c0_i32, %c0_i32_0 : i32, i32
  }
  func.func @transform_9(%arg0: i32) -> (i32, i32) {
    %c0_i32 = arith.constant 0 : i32
    %c0_i32_0 = arith.constant 0 : i32
    return %c0_i32, %arg0 : i32, i32
  }
}

</mosaic_0001>

<bundles_post_ra>
// kernel: critic_forward.1
= control target key start
LH: loop header
LB: loop body
LE: loop exit
PB: predicated region body
PF: predicated region fallthrough
CT: control target
= control target key end

     0   :  { %v472_v1 = vmov 0.0   ;;  %vm473_vm0 = vmmov 0   ;;  %s598_s0 = inlined_call_operand.<no memory space> [shape: f32[1], index: 0, kind: input, shape index: {}]   ;;  %s599_s1 = inlined_call_operand.vmem [shape: bf16[8,64], index: 1, kind: input, shape index: {}]   ;;  %s600_s2 = inlined_call_operand.vmem [shape: bf16[8,64], index: 2, kind: input, shape index: {}]   ;;  %s601_s3 = inlined_call_operand.vmem [shape: bf16[64,64], index: 3, kind: input, shape index: {}]   ;;  %s602_s4 = inlined_call_operand.vmem [shape: bf16[64,64], index: 4, kind: input, shape index: {}]   ;;  %s603_s5 = inlined_call_operand.vmem [shape: f32[1,64], index: 5, kind: input, shape index: {}]   ;;  %s604_s6 = inlined_call_operand.vmem [shape: bf16[64,32], index: 6, kind: input, shape index: {}]   ;;  %s605_s7 = inlined_call_operand.vmem [shape: f32[1,32], index: 7, kind: input, shape index: {}]   ;;  %s606_s8 = inlined_call_operand.vmem [shape: bf16[1,32], index: 8, kind: input, shape index: {}]   ;;  %s607_s9 = inlined_call_operand.hbm [shape: f32[1,8], index: 9, kind: output, shape index: {}]  }
   0x1   :  { %v434_v0 = vld [vmem:[%s602_s4] sm:$0xff]   ;;  %389 = vmatprep.subr.bf16.mxu0 %v472_v1  ;;  %401 = vmatprep.subr.bf16.mxu1 %v472_v1  ;;  %v436_v3 = vld [vmem:[%s602_s4 + $0x8] sm:$0xff]   ;;  %v438_v5 = vld [vmem:[%s602_s4 + $0x10] sm:$0xff]  }
   0x2   :  { %v435_v2 = vld [vmem:[%s601_s3] sm:$0xff]   ;;  %390 = vmatpush3.bf16.msra.mxu0 %v434_v0  ;;  %397 = vmatprep.mubr.msk.bf16.mxu0 %vm473_vm0, %v472_v1  ;;  %v437_v4 = vld [vmem:[%s601_s3 + $0x8] sm:$0xff]   ;;  %v439_v6 = vld [vmem:[%s601_s3 + $0x10] sm:$0xff]  }
   0x3   :  { %402 = vmatpush3.bf16.msra.mxu1 %v435_v2  ;;  %391 = vmatprep.subr.bf16.mxu0 %v472_v1  ;;  %v440_v7 = vld [vmem:[%s602_s4 + $0x18] sm:$0xff]  }
   0x4   :  { %403 = vmatprep.subr.bf16.mxu1 %v472_v1  ;;  %409 = vmatprep.mubr.msk.bf16.mxu1 %vm473_vm0, %v472_v1  ;;  %v441_v8 = vld [vmem:[%s601_s3 + $0x18] sm:$0xff]  }
   0x6   :  { %392 = vmatpush3.bf16.msra.mxu0 %v436_v3 }
   0x7   :  { %404 = vmatpush3.bf16.msra.mxu1 %v437_v4  ;;  %393 = vmatprep.subr.bf16.mxu0 %v472_v1 }
   0x8   :  { %405 = vmatprep.subr.bf16.mxu1 %v472_v1 }
   0xa   :  { %394 = vmatpush3.bf16.msra.mxu0 %v438_v5 }
   0xb   :  { %406 = vmatpush3.bf16.msra.mxu1 %v439_v6  ;;  %395 = vmatprep.subr.bf16.mxu0 %v472_v1 }
   0xc   :  { %15 = vsyncpa [#allocation4], 0  ;;  %407 = vmatprep.subr.bf16.mxu1 %v472_v1  ;;  %v44_v9 = vld [vmem:[%s600_s2] sm:$0xf]  ;;  %vm77_vm1 = vcmask 523264   ;;  %v443_v12 = vld [vmem:[%s604_s6 + $0x8] sm:$0xff]   ;;  %v286_v40 = vstv %s598_s0 }
   0xd   :  { %v442_v10 = vld [vmem:[%s604_s6] sm:$0xff]   ;;  %v444_v13 = vld [vmem:[%s604_s6 + $0x10] sm:$0xff]   ;;  %v445_v14 = vld [vmem:[%s604_s6 + $0x18] sm:$0xff]   ;;  %vm287_vm2 = vcmask 261120   ;;  %vm338_vm3 = vcmask 57344  }
   0xe   :  { %396 = vmatpush3.bf16.msra.mxu0 %v440_v7  ;;  %v35_v11 = vld [vmem:[%s599_s1] sm:$0xf] }
   0xf   :  { %408 = vmatpush3.bf16.msra.mxu1 %v441_v8  ;;  %413 = vmatprep.subr.bf16.mxu0 %v472_v1  ;;  %v364_v17 = vld [vmem:[%s603_s5] ss:$0 sm:$0xff] }
  0x10   :  { %425 = vmatprep.subr.bf16.mxu1 %v472_v1  ;;  %v365_v29 = vld [vmem:[%s605_s7] ss:$0 sm:$0xff]  ;;  %s474_s7 = smov [#allocation3]  }
  0x11   :  { %398 = vmatmul.mubr.msk.bf16.vlgmr.msra.gmra.mrb[0].mxu0 %vm77_vm1, %v44_v9  ;;  %v283_v39 = vld [vmem:[%s606_s8] sm:$0x1]  ;;  %s346_s18 = sshll.u32 %s474_s7, 4  ;;  %s347_s18 = int_to_ptr.vmem [resolvable:$true] %s346_s18 }
  0x12   :  { %410 = vmatmul.mubr.msk.bf16.vlgmr.msra.gmra.mrb[0].mxu1 %vm77_vm1, %v35_v11  ;;  %414 = vmatpush3.bf16.msra.mxu0 %v442_v10  ;;  %s448_s8 = scalar_lea.vmem %s347_s18, 16  ;;  %s452_s19 = scalar_lea.vmem %s347_s18, 32 }
  0x13   :  { %415 = vmatprep.subr.bf16.mxu0 %v472_v1  ;;  %421 = vmatprep.mubr.msk.bf16.mxu0 %vm473_vm0, %v472_v1  ;;  %p449_p0 = scmp.ne.s32.totalorder %s347_s18, %s448_s8  ;;  %p453_p1 = scmp.lt.s32.totalorder %s347_s18, %s347_s18 }
  0x14   :  { %427 = vmatprep.mubr.msk.bf16.mxu1 %vm473_vm0, %v472_v1  ;;  %p454_p2 = scmp.lt.s32.totalorder %s452_s19, %s448_s8 }
  0x16   :  { %416 = vmatpush3.bf16.msra.mxu0 %v443_v12  ;;  %p455_p3 = por %p454_p2, %p453_p1 }
  0x17   :  { %417 = vmatprep.subr.bf16.mxu0 %v472_v1 }
  0x18   :  { %p456_p4 = pnand %p455_p3, %p449_p0 }
  0x1a   :  { %418 = vmatpush3.bf16.msra.mxu0 %v444_v13 }
  0x1b   :  { %419 = vmatprep.subr.bf16.mxu0 %v472_v1 }
  0x1e   :  { %420 = vmatpush3.bf16.msra.mxu0 %v445_v14 }
  0xe4   :  { %v115_v15 = vpop.f32.mrb[0].mxu0 }
  0xe5   :  { %v182_v16 = vpop.f32.mrb[0].mxu1  ;;  %v399_v18 = vpop.f32.mrb[1].mxu0 }
  0xe6   :  { %v183_v19 = vadd.f32 %v182_v16, %v115_v15  ;;  %v411_v20 = vpop.f32.mrb[1].mxu1  ;;  %v118_v21 = vpop.f32.mrb[2].mxu0 }
  0xe7   :  { %v185_v22 = vpop.f32.mrb[2].mxu1  ;;  %v400_v23 = vpop.f32.mrb[3].mxu0 }
  0xe8   :  { %v195_v24 = vadd.f32 %v364_v17, %v183_v19  ;;  %v412_v25 = vpop.f32.mrb[3].mxu1 }
  0xea   :  { %v196_v26 = vmul.f32 0.01, %v195_v24 }
  0xec   :  { %v197_v27 = vmax.f32 %v195_v24, %v196_v26 }
  0xee   :  { %v198_v28 = vpack.c.bf16 %v197_v27, %v197_v27 }
  0xf0   :  { %422 = vmatmul.mubr.msk.bf16.vlgmr.msra.gmra.mrb[4].mxu0 %vm77_vm1, %v198_v28 }
 0x1c3   :  { %v275_v30 = vpop.f32.mrb[4].mxu0 }
 0x1c4   :  { %v276_v31 = vadd.f32 %v365_v29, %v275_v30  ;;  %v423_v32 = vpop.f32.mrb[5].mxu0 }
 0x1c5   :  { %v278_v33 = vpop.f32.mrb[6].mxu0 }
 0x1c6   :  { %v281_v34 = vmul.f32 0.01, %v276_v31  ;;  %v424_v35 = vpop.f32.mrb[7].mxu0 }
 0x1c8   :  { %v282_v36 = vmax.f32 %v276_v31, %v281_v34 }
 0x1ca   :  { %v284_v37 = vpack.c.bf16 %v282_v36, %v282_v36 }
 0x1cc   :  { %v292_v38 = vsel %vm287_vm2, %v284_v37, 0 }
 0x1cd   :  { %426 = vmatpush3.bf16.xpose.msra.mxu1 %v292_v38 }
 0x1d4   :  { %428 = vmatmul.mubr.msk.bf16.vlgmr.msra.gmra.mrb[4].mxu1 %vm287_vm2, %v283_v39 }
 0x2a7   :  { %v328_v41 = vpop.f32.mrb[4].mxu1 }
 0x2a8   :  { %v329_v42 = vadd.f32 %v328_v41, %v286_v40  ;;  %v429_v43 = vpop.f32.mrb[5].mxu1 }
 0x2a9   :  { %v331_v44 = vpop.f32.mrb[6].mxu1 }
 0x2aa   :  { %v334_v45 = vmul.f32 0.5, %v329_v42  ;;  %v430_v46 = vpop.f32.mrb[7].mxu1 }
 0x2ac   :  { %446 = vtanh.f32 %v334_v45 }
 0x2b6   :  { %v447_v47 = vpop.eup %446 }
 0x2b7   :  { %v336_v48 = vadd.f32 1.0, %v447_v47 }
 0x2b9   :  { %v337_v49 = vmul.f32 0.5, %v336_v48 }
 0x2bb   :  { %339 = vst.msk [vmem:[#allocation3] sm:$0x1] %vm338_vm3, %v337_v49 }
 0x2bc   :  { %459 = shalt.err (!%p456_p4)
}
 0x2bd   :  { %s460_s21 = scalar_lea.hbm %s607_s9, 16 }
 0x2be   :  { %p461_p5 = scmp.ne.s32.totalorder %s607_s9, %s460_s21  ;;  %p464_p6 = scmp.lt.u32.totalorder %s460_s21, %s607_s9 }
 0x2c0   :  { %p466_p7 = pnand %p464_p6, %p461_p5 }
 0x2c2   :  { %469 = shalt.err (!%p466_p7)
}
 0x2c3   :  { %349 = dma.vmem_to_hbm [thread:$0]  %s347_s18, 16, %s607_s9, [#allocation4]  }
 0x2c4   :  { %470 = dma.done.wait [#allocation4], 16  }
 0x2c5   :  { %471 = vsyncadd [#allocation4], 4294967280 }
 0x2c6   :  { %353 = vsyncpa [#allocation4], 1 }

</bundles_post_ra>
